<compile_context>
chip_gen: v6e
topology: v6e:2x2x1
jax: 0.10.0
libtpu: 0.0.40
codegen_flags: <defaults>
</compile_context>

<pallas_src>
import numpy as np
import jax
import jax.numpy as jnp
from jax.experimental import pallas as pl
from jax.experimental.pallas import tpu as pltpu


def _fused_gemm_kernel(p_ref, w_ref, b_ref, o_ref):
    # One lane-dense GEMM per tile: (TM, 2*C*K) @ (2*C*K, O) + (1, O)
    o_ref[...] = (jnp.dot(p_ref[...], w_ref[...],
                          preferred_element_type=jnp.float32)
                  + b_ref[...]).astype(o_ref.dtype)


def _round_up(n, m):
    return ((n + m - 1) // m) * m


def _pick_tile_m(m_rows, inner, out_w, budget_bytes=24 << 20):
    """Largest row tile (multiple of 8, <= 2048) whose double-buffered VMEM
    footprint (input tile + output tile, plus resident weight/bias) stays
    inside `budget_bytes` -- sized for v7x's 32 MiB scoped default."""
    tm = min(2048, _round_up(m_rows, 8))
    resident = 4 * (inner * out_w + out_w)          # weight + bias, f32
    while tm > 8 and 4 * 2 * tm * (inner + out_w) + 2 * resident > budget_bytes:
        tm //= 2
    return max(8, (tm // 8) * 8)


def interleaved_conv1d(x, w_left, b_left, w_right, b_right, kernel_size):
    """x: (B, C, L) float32.
    w_left:(OL, C, K), b_left:(OL,), w_right:(OR, C, K), b_right:(OR,).
    Returns (B, OL+OR, T) matching the PyTorch module."""
    B, C, L = x.shape
    K = int(kernel_size)
    OL = w_left.shape[0]
    OR = w_right.shape[0]
    O = OL + OR
    step = 2 * K

    # PyTorch Conv1d output lengths (stride=2K, dilation=2); concat along the
    # channel dim requires them to match (same constraint as the torch module).
    t_left = (L - (2 * (K - 1) + 1)) // step + 1
    t_right = (L - 1 - (2 * (K - 1) + 1)) // step + 1
    assert t_left == t_right, "left/right output lengths differ; torch.concat would fail too"
    T = t_left

    CK = C * K
    inner = 2 * CK
    M = B * T

    # --- single pass: build interleaved patches (M, 2*C*K) ------------------
    # patches[b*T+t, p*C*K + c*K + k] = x[b, c, 2K*t + 2k + p]   (p=0 even, p=1 odd)
    x_r = x[:, :, : step * T].reshape(B, C, T, K, 2)
    patches = x_r.transpose(0, 2, 4, 1, 3).reshape(M, inner).astype(jnp.float32)

    # block-diagonal weight: even rows -> left channels, odd rows -> right
    wl = w_left.reshape(OL, CK).T.astype(jnp.float32)      # (CK, OL)
    wr = w_right.reshape(OR, CK).T.astype(jnp.float32)     # (CK, OR)
    w_full = jnp.concatenate(
        [jnp.concatenate([wl, jnp.zeros((CK, OR), jnp.float32)], axis=1),
         jnp.concatenate([jnp.zeros((CK, OL), jnp.float32), wr], axis=1)],
        axis=0)                                            # (2*CK, O)
    bias = jnp.concatenate([b_left, b_right]).reshape(1, O).astype(jnp.float32)

    # --- tile M and pad so every grid step sees a full block ----------------
    TM = _pick_tile_m(M, inner, O)
    M_pad = _round_up(M, TM)
    if M_pad != M:
        patches = jnp.pad(patches, ((0, M_pad - M), (0, 0)))
    grid = (M_pad // TM,)

    cost = pl.CostEstimate(
        flops=2 * M_pad * inner * O,
        transcendentals=0,
        bytes_accessed=4 * (M_pad * inner + inner * O + O + M_pad * O))

    out = pl.pallas_call(
        _fused_gemm_kernel,
        out_shape=jax.ShapeDtypeStruct((M_pad, O), jnp.float32),
        grid=grid,
        in_specs=[
            pl.BlockSpec((TM, inner), lambda i: (i, 0)),   # streamed patches
            pl.BlockSpec((inner, O), lambda i: (0, 0)),    # VMEM-resident weight
            pl.BlockSpec((1, O), lambda i: (0, 0)),        # VMEM-resident bias
        ],
        out_specs=pl.BlockSpec((TM, O), lambda i: (i, 0)),
        compiler_params=pltpu.CompilerParams(
            dimension_semantics=("parallel",),             # megacore on v7x
            vmem_limit_bytes=32 << 20),
        cost_estimate=cost,
    )(patches, w_full, bias)

    # one final layout pass back to PyTorch's NCL output (B, O, T)
    return out[:M].reshape(B, T, O).transpose(0, 2, 1)


def _reference(x, w_left, b_left, w_right, b_right, K):
    """Pure-JAX reference matching the PyTorch Conv1d semantics."""
    B, C, L = x.shape
    T = (L - (2 * (K - 1) + 1)) // (2 * K) + 1
    x_r = x[:, :, : 2 * K * T].reshape(B, C, T, K, 2)
    left = jnp.einsum('bctk,ock->bot', x_r[..., 0], w_left) + b_left[None, :, None]
    right = jnp.einsum('bctk,ock->bot', x_r[..., 1], w_right) + b_right[None, :, None]
    return jnp.concatenate([left, right], axis=-2)


if __name__ == "__main__":
    # small shapes: batch=2, in_channels=4, out_channels=6, kernel_size=3
    B, C_in, C_out, K = 2, 4, 6, 3
    T = 4
    L = 2 * K * T
    OL = C_out // 2
    OR = C_out - C_out // 2

    key = jax.random.PRNGKey(0)
    kx, kwl, kbl, kwr, kbr = jax.random.split(key, 5)

    x = jax.random.normal(kx, (B, C_in, L), dtype=jnp.float32)
    fan_in = C_in * K
    w_left = jax.random.normal(kwl, (OL, C_in, K), dtype=jnp.float32) / np.sqrt(fan_in)
    b_left = jax.random.normal(kbl, (OL,), dtype=jnp.float32) * 0.1
    w_right = jax.random.normal(kwr, (OR, C_in, K), dtype=jnp.float32) / np.sqrt(fan_in)
    b_right = jax.random.normal(kbr, (OR,), dtype=jnp.float32) * 0.1

    out = interleaved_conv1d(x, w_left, b_left, w_right, b_right, K)
    out = jax.block_until_ready(out)

    ref = _reference(x, w_left, b_left, w_right, b_right, K)
    assert out.shape == (B, C_out, T), out.shape
    np.testing.assert_allclose(np.asarray(out), np.asarray(ref),
                               rtol=1e-5, atol=1e-5)
    print("KERNEL_OK")
</pallas_src>

<mosaic_0001>
module attributes {stable_mosaic.version = 11 : i64} {
  func.func @_fused_gemm_kernel(%arg0: i32, %arg1: memref<8x24xf32, #tpu.memory_space<vmem>>, %arg2: memref<24x6xf32, #tpu.memory_space<vmem>>, %arg3: memref<1x6xf32, #tpu.memory_space<vmem>>, %arg4: memref<8x6xf32, #tpu.memory_space<vmem>>) attributes {dimension_semantics = [#tpu.dimension_semantics<parallel>], iteration_bounds = array<i64: 1>, scalar_prefetch = 0 : i64, scratch_operands = 0 : i64, tpu.core_type = #tpu.core_type<tc>, window_params = [{transform_indices = @transform_0, window_bounds = array<i64: 8, 24>}, {pipeline_mode = #tpu.pipeline_mode<synchronous>, transform_indices = @transform_1, window_bounds = array<i64: 24, 6>}, {pipeline_mode = #tpu.pipeline_mode<synchronous>, transform_indices = @transform_2, window_bounds = array<i64: 1, 6>}, {transform_indices = @transform_3, window_bounds = array<i64: 8, 6>}]} {
    %c0 = arith.constant 0 : index
    %c0_0 = arith.constant 0 : index
    %0 = vector.load %arg1[%c0, %c0_0] : memref<8x24xf32, #tpu.memory_space<vmem>>, vector<8x24xf32>
    %c0_1 = arith.constant 0 : index
    %c0_2 = arith.constant 0 : index
    %1 = vector.load %arg2[%c0_1, %c0_2] : memref<24x6xf32, #tpu.memory_space<vmem>>, vector<24x6xf32>
    %cst = arith.constant dense<0.000000e+00> : vector<8x6xf32>
    %2 = tpu.matmul %0, %1, %cst {dimension_numbers = #tpu.dot_dimension_numbers<[1], [0], [0], [1], [0, 0, 1, 1], [], []>} : vector<8x24xf32>, vector<24x6xf32>, vector<8x6xf32> -> vector<8x6xf32>
    %c0_3 = arith.constant 0 : index
    %c0_4 = arith.constant 0 : index
    %3 = vector.load %arg3[%c0_3, %c0_4] : memref<1x6xf32, #tpu.memory_space<vmem>>, vector<1x6xf32>
    %4 = vector.broadcast %3 : vector<1x6xf32> to vector<8x6xf32>
    %5 = arith.addf %2, %4 : vector<8x6xf32>
    %c0_5 = arith.constant 0 : index
    %c0_6 = arith.constant 0 : index
    %6 = vector.load %arg4[%c0_5, %c0_6] : memref<8x6xf32, #tpu.memory_space<vmem>>, vector<8x6xf32>
    tpu.vector_store %arg4[%c0_5, %c0_6], %5 {strides = array<i32>} : memref<8x6xf32, #tpu.memory_space<vmem>>, vector<8x6xf32>,
    return
  }
  func.func @transform_0(%arg0: i32) -> (i32, i32) {
    %c0_i32 = arith.constant 0 : i32
    %c0_i32_0 = arith.constant 0 : i32
    return %arg0, %c0_i32 : i32, i32
  }
  func.func @transform_1(%arg0: i32) -> (i32, i32) {
    %c0_i32 = arith.constant 0 : i32
    %c0_i32_0 = arith.constant 0 : i32
    %c0_i32_1 = arith.constant 0 : i32
    return %c0_i32, %c0_i32_0 : i32, i32
  }
  func.func @transform_2(%arg0: i32) -> (i32, i32) {
    %c0_i32 = arith.constant 0 : i32
    %c0_i32_0 = arith.constant 0 : i32
    %c0_i32_1 = arith.constant 0 : i32
    return %c0_i32, %c0_i32_0 : i32, i32
  }
  func.func @transform_3(%arg0: i32) -> (i32, i32) {
    %c0_i32 = arith.constant 0 : i32
    %c0_i32_0 = arith.constant 0 : i32
    return %arg0, %c0_i32 : i32, i32
  }
}

</mosaic_0001>

<bundles_post_ra>
// kernel: tpu_custom_call.1
= control target key start
LH: loop header
LB: loop body
LE: loop exit
PB: predicated region body
PF: predicated region fallthrough
CT: control target
= control target key end

     0   :  { %v156_v1 = vmov 0.0   ;;  %vm157_vm0 = vmmov 0   ;;  %s197_s0 = inlined_call_operand.vmem [shape: f32[8,24], index: 0, kind: input, shape index: {}]   ;;  %s198_s1 = inlined_call_operand.vmem [shape: f32[24,6], index: 1, kind: input, shape index: {}]   ;;  %s199_s2 = inlined_call_operand.vmem [shape: f32[1,6], index: 2, kind: input, shape index: {}]   ;;  %s200_s3 = inlined_call_operand.hbm [shape: f32[8,6], index: 3, kind: output, shape index: {}]  }
   0x1   :  { %v18_v0 = vld [vmem:[%s198_s1 + $0x10] sm:$0xff]  ;;  %122 = vmatprep.subr.mxu0 %v156_v1  ;;  %v17_v2 = vld [vmem:[%s198_s1 + $0x8] sm:$0xff]  ;;  %128 = vmatprep.mubr.msk.f32.mxu0 %vm157_vm0, %v156_v1 }
   0x2   :  { %8 = vsyncpa [#allocation3], 0  ;;  %123 = vmatpush3.msra.mxu0 %v18_v0  ;;  %v16_v3 = vld [vmem:[%s198_s1] sm:$0xff]  ;;  %vm26_vm1 = vcmask 195584   ;;  %s158_s22 = smov [#allocation2]   ;;  %vm100_vm2 = vcmask 48128  }
   0x3   :  { %124 = vmatprep.subr.mxu0 %v156_v1  ;;  %v15_v4 = vld [vmem:[%s197_s0] sm:$0xff]  ;;  %s108_s23 = sshll.u32 %s158_s22, 4  ;;  %s109_s23 = int_to_ptr.vmem [resolvable:$true] %s108_s23 }
   0x4   :  { %125 = vmatpush3.msra.mxu0 %v17_v2  ;;  %v116_v5 = vld [vmem:[%s199_s2] ss:$0 sm:$0xff]  ;;  %s134_s1 = scalar_lea.vmem %s109_s23, 128  ;;  %p139_p1 = scmp.lt.s32.totalorder %s109_s23, %s109_s23 }
   0x5   :  { %126 = vmatprep.subr.mxu0 %v156_v1  ;;  %p135_p0 = scmp.ne.s32.totalorder %s109_s23, %s134_s1  ;;  %p140_p2 = scmp.lt.s32.totalorder %s134_s1, %s134_s1 }
   0x6   :  { %127 = vmatpush3.msra.mxu0 %v16_v3 }
   0x7   :  { %129 = vmatmul.mubr.msk.f32.vlgmr.msra.gmra.mxu0 %vm26_vm1, %v15_v4  ;;  %p141_p3 = por %p140_p2, %p139_p1 }
   0x9   :  { %p142_p4 = pnand %p141_p3, %p135_p0 }
  0xc7   :  { %v96_v6 = vpop.f32.mrf.mxu0 }
  0xc8   :  { %v97_v7 = vadd.f32 %v116_v5, %v96_v6 }
  0xc9   :  { %v130_v8 = vpop.f32.mrf.mxu0 }
  0xca   :  { %101 = vst.msk [vmem:[#allocation2] sm:$0xff] %vm100_vm2, %v97_v7 }
  0xcb   :  { %145 = shalt.err (!%p142_p4)
}
  0xcc   :  { %111 = dma.vmem_to_hbm [thread:$0]  %s109_s23, 128, %s200_s3, [#allocation3]  }
  0xcd   :  { %154 = dma.done.wait [#allocation3], 128  }
  0xce   :  { %155 = vsyncadd [#allocation3], 4294967168 }
  0xcf   :  { %115 = vsyncpa [#allocation3], 1 }

</bundles_post_ra>
